<compile_context>
chip_gen: v7x
topology: tpu7x:2x2x1
jax: 0.10.0
libtpu: 0.0.40
codegen_flags: <defaults>
</compile_context>

<pallas_src>
import functools

import jax
import jax.numpy as jnp
from jax import lax
from jax.experimental import pallas as pl
from jax.experimental.pallas import tpu as pltpu


def _round_up(x, m):
    return ((x + m - 1) // m) * m


def _folded_dim(size, unit):
    # Halve while the half remains a positive multiple of `unit`.
    while size % 2 == 0 and (size // 2) >= unit and (size // 2) % unit == 0:
        size //= 2
    return size


def _fold_value(v):
    # VPU-only tree reduction of a (tb, tn) f32 tile down to a near-vreg
    # partial.  Every slice stays (8,128)-block aligned -> no XLU / relayout.
    t0 = _folded_dim(v.shape[0], 8)
    while v.shape[0] > t0:
        h = v.shape[0] // 2
        v = v[:h, :] + v[h:, :]
    t1 = _folded_dim(v.shape[1], 128)
    while v.shape[1] > t1:
        h = v.shape[1] // 2
        v = v[:, :h] + v[:, h:]
    return v


def _ll_poisson_kernel(k_ref, lam_ref, o_ref, acc_ref, *, dt, B, N, tb, tn,
                       mask_rows, mask_cols):
    jn = pl.program_id(0)   # N-tile index ("parallel": TC-sharded on v7x)
    ib = pl.program_id(1)   # B-tile index ("arbitrary": accumulation axis)
    nb = pl.num_programs(1)

    @pl.when(ib == 0)
    def _():
        acc_ref[...] = jnp.zeros_like(acc_ref)

    def _accumulate(masked):
        k = k_ref[...].astype(jnp.float32)
        lam = lam_ref[...].astype(jnp.float32)
        if dt != 1.0:                         # trace-time constant
            lam = lam * jnp.float32(dt)
        if masked:
            shape = (tb, tn)
            m = None
            if mask_rows:
                row = ib * tb + lax.broadcasted_iota(jnp.int32, shape, 0)
                m = row < B
            if mask_cols:
                col = jn * tn + lax.broadcasted_iota(jnp.int32, shape, 1)
                cm = col < N
                m = cm if m is None else (m & cm)
            # Mask the *inputs* so log() never sees padded garbage (no
            # NaN/-inf produced) and masked lanes contribute exactly 0.
            k = jnp.where(m, k, jnp.float32(0.0))
            lam_log = jnp.where(m, lam, jnp.float32(1.0))
            val = k * jnp.log(lam_log) - jnp.where(m, lam, jnp.float32(0.0))
        else:
            # NOTE: like the PyTorch reference, log(lam*dt) is NaN/-inf for
            # non-positive lam*dt; not guarded here.
            val = k * jnp.log(lam) - lam
        acc_ref[...] += _fold_value(val)

    if mask_rows or mask_cols:
        preds = []
        if mask_rows:
            preds.append(ib == nb - 1)
        if mask_cols:
            preds.append(jn == pl.num_programs(0) - 1)
        is_tail = preds[0] if len(preds) == 1 else (preds[0] | preds[1])

        @pl.when(is_tail)
        def _():
            _accumulate(True)

        @pl.when(jnp.logical_not(is_tail))
        def _():
            _accumulate(False)
    else:
        _accumulate(False)

    @pl.when(ib == nb - 1)
    def _():
        # Single cross-lane reduction per N-slab, written to its SMEM partial.
        o_ref[0, 0] = jnp.sum(acc_ref[...])


def _num_tensorcores():
    try:
        kind = jax.devices()[0].device_kind.lower()
    except Exception:
        return 1
    return 2 if "v7" in kind else 1          # v5e / v6e: single TensorCore


def _vmem_capacity_bytes():
    try:
        return int(pltpu.get_tpu_info().vmem_capacity_bytes)
    except Exception:
        return 64 << 20                       # conservative: v7x per-TC VMEM


def loglikelihood_poisson_simple(k, lam, dt=1.0, *, tb=512, tn=2048,
                                 num_cores=None):
    """Pallas implementation of (k * log(lam*dt) - lam*dt).mean(0).sum()."""
    assert k.shape == lam.shape and k.ndim == 2
    B, N = k.shape

    if num_cores is None:
        num_cores = _num_tensorcores()

    # Full-dim blocks are always legal; otherwise keep (8,128)-aligned
    # defaults and mask boundary tiles in-kernel.
    tb = B if B <= tb else tb
    tn = N if N <= tn else tn

    # Megacore (v7x): make sure every TensorCore gets at least one N-slab.
    if num_cores > 1 and pl.cdiv(N, tn) < num_cores:
        tn_split = _round_up(pl.cdiv(N, num_cores), 128)
        if 128 <= tn_split < tn:
            tn = tn_split

    nb = pl.cdiv(B, tb)
    nn = pl.cdiv(N, tn)

    mask_rows = (B % tb) != 0
    mask_cols = (N % tn) != 0

    fr = _folded_dim(tb, 8)
    fc = _folded_dim(tn, 128)

    kernel = functools.partial(
        _ll_poisson_kernel, dt=float(dt), B=B, N=N, tb=tb, tn=tn,
        mask_rows=mask_rows, mask_cols=mask_cols)

    # VMEM budget: 2 pipeline buffers per input tile + small accumulator.
    vmem_budget = (2 * tb * tn * (jnp.dtype(k.dtype).itemsize
                                  + jnp.dtype(lam.dtype).itemsize)
                   + fr * fc * 4 + (2 << 20))
    vmem_cap = int(0.75 * _vmem_capacity_bytes())      # generation-aware cap
    vmem_limit = int(min(max(vmem_budget, 32 << 20), vmem_cap))

    partials = pl.pallas_call(
        kernel,
        out_shape=jax.ShapeDtypeStruct((nn, 1), jnp.float32),
        grid_spec=pltpu.PrefetchScalarGridSpec(
            num_scalar_prefetch=0,
            grid=(nn, nb),
            in_specs=[
                pl.BlockSpec((tb, tn), lambda jn, ib: (ib, jn)),
                pl.BlockSpec((tb, tn), lambda jn, ib: (ib, jn)),
            ],
            out_specs=pl.BlockSpec((1, 1), lambda jn, ib: (jn, 0),
                                   memory_space=pltpu.SMEM),
            scratch_shapes=[pltpu.VMEM((fr, fc), jnp.float32)],
        ),
        compiler_params=pltpu.CompilerParams(
            dimension_semantics=("parallel", "arbitrary"),
            vmem_limit_bytes=vmem_limit,
        ),
    )(k, lam)

    # mean over dim 0 then sum over the rest == total_sum / B
    return (jnp.sum(partials) / jnp.float32(B)).astype(jnp.float32)


if __name__ == "__main__":
    key = jax.random.PRNGKey(0)
    kk, kl, kk3, kl3 = jax.random.split(key, 4)

    # Test 1: small, tile-aligned shape, dt != 1.
    B, N, dt = 8, 256, 0.5
    k = jax.random.randint(kk, (B, N), minval=0, maxval=5).astype(jnp.float32)
    lam = jax.random.uniform(kl, (B, N), minval=0.1, maxval=3.0,
                             dtype=jnp.float32)
    out = jax.block_until_ready(loglikelihood_poisson_simple(k, lam, dt=dt))
    ref = jnp.sum(jnp.mean(k * jnp.log(lam * dt) - lam * dt, axis=0))
    assert jnp.allclose(out, ref, rtol=1e-4, atol=1e-4), (out, ref)

    # Test 2: ragged shape with forced small tiles to exercise the boundary
    # masking on both axes (and dt == 1 fast path).
    B2, N2 = 12, 200
    k2 = jax.random.randint(kk, (B2, N2), minval=0, maxval=5).astype(
        jnp.float32)
    lam2 = jax.random.uniform(kl, (B2, N2), minval=0.1, maxval=3.0,
                              dtype=jnp.float32)
    out2 = jax.block_until_ready(
        loglikelihood_poisson_simple(k2, lam2, dt=1.0, tb=8, tn=128))
    ref2 = jnp.sum(jnp.mean(k2 * jnp.log(lam2) - lam2, axis=0))
    assert jnp.allclose(out2, ref2, rtol=1e-4, atol=1e-4), (out2, ref2)

    # Test 3: narrow input dtypes (int32 counts, bf16 rates) streamed as-is,
    # accumulated in f32 inside the kernel.
    B3, N3, dt3 = 32, 384, 0.25
    k3 = jax.random.randint(kk3, (B3, N3), minval=0, maxval=7,
                            dtype=jnp.int32)
    lam3 = jax.random.uniform(kl3, (B3, N3), minval=0.2, maxval=2.0,
                              dtype=jnp.float32).astype(jnp.bfloat16)
    out3 = jax.block_until_ready(
        loglikelihood_poisson_simple(k3, lam3, dt=dt3))
    k3f = k3.astype(jnp.float32)
    lam3f = lam3.astype(jnp.float32) * dt3
    ref3 = jnp.sum(jnp.mean(k3f * jnp.log(lam3f) - lam3f, axis=0))
    assert jnp.allclose(out3, ref3, rtol=1e-3, atol=1e-3), (out3, ref3)

    print("KERNEL_OK")
</pallas_src>

<mosaic_0001>
module attributes {stable_mosaic.version = 11 : i64} {
  func.func @_ll_poisson_kernel(%arg0: i32, %arg1: i32, %arg2: memref<8x256xf32, #tpu.memory_space<vmem>>, %arg3: memref<8x256xf32, #tpu.memory_space<vmem>>, %arg4: memref<1x1xf32, #tpu.memory_space<smem>>, %arg5: memref<8x128xf32, #tpu.memory_space<vmem>>) attributes {dimension_semantics = [#tpu.dimension_semantics<parallel>, #tpu.dimension_semantics<arbitrary>], iteration_bounds = array<i64: 1, 1>, scalar_prefetch = 0 : i64, scratch_operands = 1 : i64, tpu.core_type = #tpu.core_type<tc>, window_params = [{transform_indices = @transform_0, window_bounds = array<i64: 8, 256>}, {transform_indices = @transform_1, window_bounds = array<i64: 8, 256>}, {transform_indices = @transform_2, window_bounds = array<i64: 1, 1>}]} {
    %c0_i32 = arith.constant 0 : i32
    %0 = arith.cmpi eq, %arg1, %c0_i32 : i32
    %1 = arith.extui %0 : i1 to i32
    %c0_i32_0 = arith.constant 0 : i32
    %2 = arith.cmpi ne, %1, %c0_i32_0 : i32
    scf.if %2 {
      %cst_10 = arith.constant 0.000000e+00 : f32
      %19 = vector.broadcast %cst_10 : f32 to vector<8x128xf32>
      %c0_11 = arith.constant 0 : index
      %c0_12 = arith.constant 0 : index
      %20 = vector.load %arg5[%c0_11, %c0_12] : memref<8x128xf32, #tpu.memory_space<vmem>>, vector<8x128xf32>
      tpu.vector_store %arg5[%c0_11, %c0_12], %19 {strides = array<i32>} : memref<8x128xf32, #tpu.memory_space<vmem>>, vector<8x128xf32>,
    } else {
    }
    %c0 = arith.constant 0 : index
    %c0_1 = arith.constant 0 : index
    %3 = vector.load %arg2[%c0, %c0_1] : memref<8x256xf32, #tpu.memory_space<vmem>>, vector<8x256xf32>
    %c0_2 = arith.constant 0 : index
    %c0_3 = arith.constant 0 : index
    %4 = vector.load %arg3[%c0_2, %c0_3] : memref<8x256xf32, #tpu.memory_space<vmem>>, vector<8x256xf32>
    %cst = arith.constant 5.000000e-01 : f32
    %5 = vector.broadcast %cst : f32 to vector<8x256xf32>
    %6 = arith.mulf %4, %5 : vector<8x256xf32>
    %7 = math.log %6 : vector<8x256xf32>
    %8 = arith.mulf %3, %7 : vector<8x256xf32>
    %9 = arith.subf %8, %6 : vector<8x256xf32>
    %c0_4 = arith.constant 0 : index
    %c0_5 = arith.constant 0 : index
    %10 = vector.load %arg5[%c0_4, %c0_5] : memref<8x128xf32, #tpu.memory_space<vmem>>, vector<8x128xf32>
    %11 = vector.extract_strided_slice %9 {offsets = [0, 0], sizes = [8, 128], strides = [1, 1]} : vector<8x256xf32> to vector<8x128xf32>
    %12 = vector.extract_strided_slice %9 {offsets = [0, 128], sizes = [8, 128], strides = [1, 1]} : vector<8x256xf32> to vector<8x128xf32>
    %13 = arith.addf %11, %12 : vector<8x128xf32>
    %14 = arith.addf %10, %13 : vector<8x128xf32>
    %c0_6 = arith.constant 0 : index
    %c0_7 = arith.constant 0 : index
    %15 = vector.load %arg5[%c0_6, %c0_7] : memref<8x128xf32, #tpu.memory_space<vmem>>, vector<8x128xf32>
    tpu.vector_store %arg5[%c0_6, %c0_7], %14 {strides = array<i32>} : memref<8x128xf32, #tpu.memory_space<vmem>>, vector<8x128xf32>,
    %c0_i32_8 = arith.constant 0 : i32
    %16 = arith.cmpi eq, %arg1, %c0_i32_8 : i32
    %17 = arith.extui %16 : i1 to i32
    %c0_i32_9 = arith.constant 0 : i32
    %18 = arith.cmpi ne, %17, %c0_i32_9 : i32
    scf.if %18 {
      %c0_10 = arith.constant 0 : index
      %c0_11 = arith.constant 0 : index
      %19 = vector.load %arg5[%c0_10, %c0_11] : memref<8x128xf32, #tpu.memory_space<vmem>>, vector<8x128xf32>
      %20 = vector.shape_cast %19 : vector<8x128xf32> to vector<1x8x128xf32>
      %cst_12 = arith.constant dense<0.000000e+00> : vector<1xf32>
      %21 = vector.multi_reduction <add>, %20, %cst_12 [1, 2] : vector<1x8x128xf32> to vector<1xf32>
      %22 = vector.shape_cast %21 : vector<1xf32> to vector<1x1x1xf32>
      %23 = vector.extract %22[0, 0, 0] : f32 from vector<1x1x1xf32>
      %c0_13 = arith.constant 0 : index
      %c0_14 = arith.constant 0 : index
      %24 = memref.load %arg4[%c0_13, %c0_14] : memref<1x1xf32, #tpu.memory_space<smem>>
      memref.store %23, %arg4[%c0_13, %c0_14] : memref<1x1xf32, #tpu.memory_space<smem>>
    } else {
    }
    return
  }
  func.func @transform_0(%arg0: i32, %arg1: i32) -> (i32, i32) {
    %c0_i32 = arith.constant 0 : i32
    return %arg1, %arg0 : i32, i32
  }
  func.func @transform_1(%arg0: i32, %arg1: i32) -> (i32, i32) {
    %c0_i32 = arith.constant 0 : i32
    return %arg1, %arg0 : i32, i32
  }
  func.func @transform_2(%arg0: i32, %arg1: i32) -> (i32, i32) {
    %c0_i32 = arith.constant 0 : i32
    %c0_i32_0 = arith.constant 0 : i32
    return %arg0, %c0_i32 : i32, i32
  }
}

</mosaic_0001>

<bundles_post_ra>
// kernel: tpu_custom_call.1
= control target key start
LH: loop header
LB: loop body
LE: loop exit
PB: predicated region body
PF: predicated region fallthrough
CT: control target
= control target key end

     0   :  { %7 = vsyncpa [#allocation4], 0  ;;  %s212_s0 = inlined_call_operand.hbm [shape: f32[8,256], index: 0, kind: input, shape index: {}]   ;;  %s213_s1 = inlined_call_operand.hbm [shape: f32[8,256], index: 1, kind: input, shape index: {}]   ;;  %s214_s2 = inlined_call_operand.hbm [shape: f32[1,1], index: 2, kind: output, shape index: {}]  }
   0x1   :  { %8 = vsyncpa [#allocation7], 0 }
   0x2   :  { %9 = vsyncpa [#allocation5], 0  ;;  %s158_s9 = smov [#allocation3]   ;;  %s159_s11 = smov [#allocation6]  }
   0x3   :  { %s16_s10 = sshll.u32 %s158_s9, 4  ;;  %s26_s12 = sshll.u32 %s159_s11, 4  ;;  %s17_s10 = int_to_ptr.vmem [resolvable:$true] %s16_s10  ;;  %s27_s12 = int_to_ptr.vmem [resolvable:$true] %s26_s12 }
   0x4   :  { %s98_s15 = scalar_lea.hbm %s212_s0, 256 }
   0x5   :  { %p99_p0 = scmp.ne.s32.totalorder %s212_s0, %s98_s15  ;;  %p102_p1 = scmp.lt.u32.totalorder %s98_s15, %s212_s0 }
   0x7   :  { %p104_p2 = pnand %p102_p1, %p99_p0 }
   0x9   :  { %107 = shalt.err (!%p104_p2)
}
   0xa   :  { %s108_s20 = scalar_lea.vmem %s17_s10, 256  ;;  %p113_p4 = scmp.lt.s32.totalorder %s17_s10, %s17_s10 }
   0xb   :  { %p109_p3 = scmp.ne.s32.totalorder %s17_s10, %s108_s20  ;;  %p114_p5 = scmp.lt.s32.totalorder %s108_s20, %s108_s20 }
   0xd   :  { %p115_p6 = por %p114_p5, %p113_p4 }
   0xf   :  { %p116_p7 = pnand %p115_p6, %p109_p3 }
  0x11   :  { %119 = shalt.err (!%p116_p7)
}
  0x12   :  { %19 = dma.hbm_to_vmem [thread:$0]  %s212_s0, 256, %s17_s10, [#allocation4]  }
  0x13   :  { %s120_s25 = scalar_lea.hbm %s213_s1, 256 }
  0x14   :  { %p121_p8 = scmp.ne.s32.totalorder %s213_s1, %s120_s25  ;;  %p124_p9 = scmp.lt.u32.totalorder %s120_s25, %s213_s1 }
  0x16   :  { %p126_p10 = pnand %p124_p9, %p121_p8 }
  0x18   :  { %129 = shalt.err (!%p126_p10)
}
  0x19   :  { %s130_s30 = scalar_lea.vmem %s27_s12, 256  ;;  %p135_p12 = scmp.lt.s32.totalorder %s27_s12, %s27_s12 }
  0x1a   :  { %p131_p11 = scmp.ne.s32.totalorder %s27_s12, %s130_s30  ;;  %p136_p13 = scmp.lt.s32.totalorder %s130_s30, %s130_s30 }
  0x1c   :  { %p137_p0 = por %p136_p13, %p135_p12 }
  0x1e   :  { %p138_p1 = pnand %p137_p0, %p131_p11 }
  0x20   :  { %141 = shalt.err (!%p138_p1)
}
  0x21   :  { %29 = dma.hbm_to_vmem [thread:$0]  %s213_s1, 256, %s27_s12, [#allocation7]  }
  0x22   :  { %152 = dma.done.wait [#allocation4], 256  }
  0x23   :  { %153 = vsyncadd [#allocation4], 4294967040 }
  0x24   :  { %154 = dma.done.wait [#allocation7], 256  }
  0x25   :  { %155 = vsyncadd [#allocation7], 4294967040  ;;  %v43_v0 = vld [vmem:[#allocation6] sm:$0xff]  ;;  %v44_v1 = vld [vmem:[#allocation6 + $0x8] sm:$0xff]  ;;  %s142_s6 = scalar_lea.hbm %s214_s2, 16 }
  0x26   :  { %v45_v2 = vmul.f32 0.5, %v43_v0  ;;  %v46_v3 = vmul.f32 0.5, %v44_v1  ;;  %v41_v5 = vld [vmem:[#allocation3] sm:$0xff]  ;;  %v42_v7 = vld [vmem:[#allocation3 + $0x8] sm:$0xff]  ;;  %p143_p2 = scmp.ne.s32.totalorder %s214_s2, %s142_s6  ;;  %p146_p3 = scmp.lt.u32.totalorder %s142_s6, %s214_s2 }
  0x28   :  { %94 = vlog2.f32 %v45_v2  ;;  %p148_p4 = pnand %p146_p3, %p143_p2 }
  0x29   :  { %96 = vlog2.f32 %v46_v3 }
  0x32   :  { %v95_v4 = vpop.eup %94 }
  0x33   :  { %v97_v6 = vpop.eup %96  ;;  %v48_v8 = vmul.f32 0.6931472, %v95_v4 }
  0x34   :  { %v50_v9 = vmul.f32 0.6931472, %v97_v6 }
  0x35   :  { %v51_v10 = vmul.f32 %v48_v8, %v41_v5 }
  0x36   :  { %v52_v11 = vmul.f32 %v50_v9, %v42_v7 }
  0x37   :  { %v53_v12 = vsub.f32 %v51_v10, %v45_v2 }
  0x38   :  { %v54_v13 = vsub.f32 %v52_v11, %v46_v3 }
  0x3a   :  { %v56_v14 = vadd.f32 %v54_v13, %v53_v12 }
  0x3c   :  { %63 = vadd.xlane.f32.xlu0 %v56_v14 }
  0xc9   :  { %v64_v15 = vpop.xlane.xlu0 %63 }
  0xca   :  { %v65_v16 = vrot.slane %v64_v15, 4 }
  0xcc   :  { %v66_v17 = vadd.f32 %v65_v16, %v64_v15 }
  0xce   :  { %v67_v18 = vrot.slane %v66_v17, 2 }
  0xd0   :  { %v68_v19 = vadd.f32 %v67_v18, %v66_v17 }
  0xd2   :  { %v69_v20 = vrot.slane %v68_v19, 1 }
  0xd4   :  { %v70_v21 = vadd.f32 %v69_v20, %v68_v19 }
  0xd6   :  { %89 = vpush %v70_v21 }
 0x107   :  { %s90_s1 = spop %89 }
 0x108   :  { %73 = sst [smem:[#allocation8]] %s90_s1 }
 0x109   :  { %151 = shalt.err (!%p148_p4)
}
 0x10a   :  { %s160_s11 = smov [#allocation8]  }
 0x10b   :  { %81 = dma.smem_to_hbm %s160_s11, 16, %s214_s2, [#allocation5]  }
 0x10c   :  { %156 = dma.done.wait [#allocation5], 16  }
 0x10d   :  { %157 = vsyncadd [#allocation5], 4294967280 }
 0x10e   :  { %85 = sfence }
 0x10f   :  { %86 = vsyncpa [#allocation4], 1 }
 0x110   :  { %87 = vsyncpa [#allocation7], 1 }
 0x111   :  { %88 = vsyncpa [#allocation5], 1 }

</bundles_post_ra>
